<compile_context>
chip_gen: v5e
topology: v5e:2x2
jax: 0.10.0
libtpu: 0.0.40
codegen_flags: <defaults>
</compile_context>

<pallas_src>
import functools

import jax
import jax.numpy as jnp
from jax.experimental import pallas as pl
from jax.experimental.pallas import tpu as pltpu


_LANE = 128


def _round_up(x, m):
    return ((x + m - 1) // m) * m


def _full_spec(arr):
    # Full-array block (all shapes here are a few KiB, far below VMEM limits).
    return pl.BlockSpec(arr.shape, lambda *_: (0,) * arr.ndim)


def _compiler_params():
    return pltpu.CompilerParams(dimension_semantics=("arbitrary",))


def _apply_act(h, name):
    if name == "relu":
        return jnp.maximum(h, 0.0)
    if name == "sigmoid":
        return jax.nn.sigmoid(h)
    if name == "tanh":
        return jnp.tanh(h)
    return h  # "none"


# ----------------------------------------------------------------------------
# Kernel 1: fused actor_1 MLP + attention unit + pairwise thought distances
# ----------------------------------------------------------------------------
def _actor1_attn_dist_kernel(T, A, B, pad, obs_ref,
                             w1_ref, b1_ref, w2_ref, b2_ref,
                             aw1_ref, ab1_ref, aw2_ref, ab2_ref,
                             aw3_ref, ab3_ref, out_ref):
    obs = obs_ref[...].astype(jnp.float32)                       # (R, N), R=B*A
    R = obs.shape[0]

    # actor_1: MLP(obs -> e1 -> T), ReLU after each layer
    h = jnp.maximum(jnp.dot(obs, w1_ref[...],
                            preferred_element_type=jnp.float32) + b1_ref[...], 0.0)
    cur = jnp.maximum(jnp.dot(h, w2_ref[...],
                              preferred_element_type=jnp.float32) + b2_ref[...], 0.0)

    # attention unit: fc1/fc2 ReLU, fc3 Sigmoid
    a = jnp.maximum(jnp.dot(cur, aw1_ref[...],
                            preferred_element_type=jnp.float32) + ab1_ref[...], 0.0)
    a = jnp.maximum(jnp.dot(a, aw2_ref[...],
                            preferred_element_type=jnp.float32) + ab2_ref[...], 0.0)
    prob = jax.nn.sigmoid(jnp.dot(a, aw3_ref[...],
                                  preferred_element_type=jnp.float32) + ab3_ref[...])

    # per-batch pairwise distances: |t_i|^2 - 2 t_i.t_j + |t_j|^2 (B unrolled)
    dist_rows = []
    for b in range(B):
        cb = cur[b * A:(b + 1) * A, :]                           # (A, T)
        dot = jnp.dot(cb, cb.T, preferred_element_type=jnp.float32)   # (A, A)
        sq = jnp.sum(cb * cb, axis=1, keepdims=True)             # (A, 1)
        dist_rows.append(sq.T - 2.0 * dot + sq)                  # (A, A)
    dists = jnp.concatenate(dist_rows, axis=0)                   # (R, A)

    # single lane-dense (R, 128) output slab: [current | prob | dists | 0-pad]
    pieces = [cur, prob, dists]
    pad_cols = pad - (T + 1 + A)
    if pad_cols > 0:
        pieces.append(jnp.zeros((R, pad_cols), jnp.float32))
    out_ref[...] = jnp.concatenate(pieces, axis=-1)


# ----------------------------------------------------------------------------
# Kernel 2: dual-input MLP chain (actor_2 and critic head)
# ----------------------------------------------------------------------------
def _dual_mlp_kernel(acts, x1_ref, x2_ref, w1a_ref, w1b_ref, b1_ref, *refs):
    out_ref = refs[-1]
    h = (jnp.dot(x1_ref[...], w1a_ref[...], preferred_element_type=jnp.float32)
         + jnp.dot(x2_ref[...], w1b_ref[...], preferred_element_type=jnp.float32)
         + b1_ref[...])
    h = _apply_act(h, acts[0])
    for li, name in enumerate(acts[1:]):
        w = refs[2 * li][...]
        b = refs[2 * li + 1][...]
        h = _apply_act(jnp.dot(h, w, preferred_element_type=jnp.float32) + b, name)
    out_ref[...] = h


def _dual_mlp(acts, x1, x2, w1a, w1b, b1, rest):
    R = x1.shape[0]
    out_dim = rest[-1][0].shape[1]
    params = [w1a, w1b, b1]
    for (w, b) in rest:
        params.extend([w, b])
    return pl.pallas_call(
        functools.partial(_dual_mlp_kernel, tuple(acts)),
        out_shape=jax.ShapeDtypeStruct((R, out_dim), jnp.float32),
        grid=(1,),
        in_specs=[_full_spec(x1), _full_spec(x2)] + [_full_spec(p) for p in params],
        out_specs=pl.BlockSpec((R, out_dim), lambda *_: (0, 0)),
        compiler_params=_compiler_params(),
    )(x1, x2, *params)


# ----------------------------------------------------------------------------
# Kernel 3: bidirectional LSTM (PyTorch gate order i, f, g, o)
# ----------------------------------------------------------------------------
def _bilstm_kernel(H, M, x_ref, wih_cat_ref, whh_f_ref, b_f_ref,
                   whh_b_ref, b_b_ref, out_ref):
    BL = x_ref.shape[1]
    wih_cat = wih_cat_ref[...]                                    # (T, 8H)
    whh_f = whh_f_ref[...]
    b_f = b_f_ref[...]
    whh_b = whh_b_ref[...]
    b_b = b_b_ref[...]

    # hoisted input projection (outside the serial recurrence), both directions
    xproj = [jnp.dot(x_ref[t].astype(jnp.float32), wih_cat,
                     preferred_element_type=jnp.float32) for t in range(M)]

    def cell(xg, h, c, whh, b):
        gates = xg + jnp.dot(h, whh, preferred_element_type=jnp.float32) + b
        s = jax.nn.sigmoid(gates)       # one whole-block EUP op
        tg = jnp.tanh(gates)            # one whole-block EUP op
        i = s[:, 0 * H:1 * H]
        f = s[:, 1 * H:2 * H]
        g = tg[:, 2 * H:3 * H]
        o = s[:, 3 * H:4 * H]
        c_new = f * c + i * g
        h_new = o * jnp.tanh(c_new)
        return h_new, c_new

    # forward direction
    h = jnp.zeros((BL, H), jnp.float32)
    c = jnp.zeros((BL, H), jnp.float32)
    for t in range(M):
        h, c = cell(xproj[t][:, 0:4 * H], h, c, whh_f, b_f)
        out_ref[t, :, 0:H] = h

    # backward direction
    h = jnp.zeros((BL, H), jnp.float32)
    c = jnp.zeros((BL, H), jnp.float32)
    for t in range(M - 1, -1, -1):
        h, c = cell(xproj[t][:, 4 * H:8 * H], h, c, whh_b, b_b)
        out_ref[t, :, H:2 * H] = h


def _bilstm(x, wih_cat, whh_f, b_f, whh_b, b_b):
    M, BL, _ = x.shape
    H = whh_f.shape[0]
    args = (x, wih_cat, whh_f, b_f, whh_b, b_b)
    return pl.pallas_call(
        functools.partial(_bilstm_kernel, H, M),
        out_shape=jax.ShapeDtypeStruct((M, BL, 2 * H), jnp.float32),
        grid=(1,),
        in_specs=[_full_spec(a) for a in args],
        out_specs=pl.BlockSpec((M, BL, 2 * H), lambda *_: (0, 0, 0)),
        compiler_params=_compiler_params(),
    )(*args)


# ----------------------------------------------------------------------------
# Deterministic parameter construction (synthetic, not a checkpoint load)
# ----------------------------------------------------------------------------
def _init_linear(key, fan_in, fan_out):
    k1, k2 = jax.random.split(key)
    bound = 1.0 / jnp.sqrt(float(fan_in))
    w = jax.random.uniform(k1, (fan_in, fan_out), jnp.float32, -bound, bound)
    b = jax.random.uniform(k2, (1, fan_out), jnp.float32, -bound, bound)
    return w, b


class ATOCPallas:
    """Pallas/JAX re-implementation of ATOC forward (compute_actor / compute_critic)."""

    mode = ["compute_actor", "compute_critic"]

    def __init__(self, key, obs_shape, action_shape, thought_size, n_agent,
                 agent_per_group=2, initiator_threshold=0.5,
                 attention_embedding_size=64,
                 actor_1_embedding_size=None, actor_2_embedding_size=None,
                 critic_head_hidden_size=64):
        assert thought_size % 2 == 0
        T = thought_size
        e1 = actor_1_embedding_size or T
        e2 = actor_2_embedding_size or T
        self.n_agent = n_agent
        self.obs_shape = obs_shape
        self.act_shape = action_shape
        self.agent_per_group = agent_per_group
        self.thr = initiator_threshold
        self.T = T
        self.H = T // 2

        # lane-dense output paddings
        self.slab_pad = _round_up(T + 1 + n_agent, _LANE)
        self.actor2_pad = _round_up(max(action_shape, 1), _LANE)
        self.critic_pad = _LANE

        keys = jax.random.split(key, 15)
        # actor_1: MLP(obs -> e1 -> T), ReLU after each layer
        self.a1_w1, self.a1_b1 = _init_linear(keys[0], obs_shape, e1)
        self.a1_w2, self.a1_b2 = _init_linear(keys[1], e1, T)
        # attention unit: fc1/fc2 ReLU, fc3 Sigmoid
        ae = attention_embedding_size
        self.at_w1, self.at_b1 = _init_linear(keys[2], T, ae)
        self.at_w2, self.at_b2 = _init_linear(keys[3], ae, ae)
        self.at_w3, self.at_b3 = _init_linear(keys[4], ae, 1)

        # communication net: bidirectional LSTM, hidden = T // 2
        # NOTE: single bias per direction (PyTorch uses b_ih + b_hh; identical
        # functional form, only matters if porting a real torch checkpoint).
        H = self.H

        def lstm_dir(k):
            k1, k2, k3 = jax.random.split(k, 3)
            bound = 1.0 / jnp.sqrt(float(H))
            wih = jax.random.uniform(k1, (T, 4 * H), jnp.float32, -bound, bound)
            whh = jax.random.uniform(k2, (H, 4 * H), jnp.float32, -bound, bound)
            b = jax.random.uniform(k3, (1, 4 * H), jnp.float32, -bound, bound)
            return wih, whh, b

        wih_f, self.whh_f, self.b_f = lstm_dir(keys[5])
        wih_b, self.whh_b, self.b_b = lstm_dir(keys[6])
        self.wih_cat = jnp.concatenate([wih_f, wih_b], axis=1)    # (T, 8H)

        # actor_2: Linear(2T,e2)+ReLU ; MLP(e2,e2)x2 ReLU ; Linear(e2,act)+Tanh
        w1, self.a2_b1 = _init_linear(keys[7], 2 * T, e2)
        self.a2_w1a, self.a2_w1b = w1[:T], w1[T:]                 # split 2T input
        self.a2_w2, self.a2_b2 = _init_linear(keys[8], e2, e2)
        self.a2_w3, self.a2_b3 = _init_linear(keys[9], e2, e2)
        w4, b4 = _init_linear(keys[10], e2, action_shape)
        self.a2_w4 = jnp.pad(w4, ((0, 0), (0, self.actor2_pad - action_shape)))
        self.a2_b4 = jnp.pad(b4, ((0, 0), (0, self.actor2_pad - action_shape)))

        # critic: Linear(obs+act, ch)+ReLU ; MLP(ch,ch)x2 ReLU ; Linear(ch,1)
        ch = critic_head_hidden_size
        wc1, self.c_b1 = _init_linear(keys[11], obs_shape + action_shape, ch)
        self.c_w1a, self.c_w1b = wc1[:obs_shape], wc1[obs_shape:]
        self.c_w2, self.c_b2 = _init_linear(keys[12], ch, ch)
        self.c_w3, self.c_b3 = _init_linear(keys[13], ch, ch)
        wc4, bc4 = _init_linear(keys[14], ch, 1)
        self.c_w4 = jnp.pad(wc4, ((0, 0), (0, self.critic_pad - 1)))
        self.c_b4 = jnp.pad(bc4, ((0, 0), (0, self.critic_pad - 1)))

    # ---------------- fused front end ----------------
    def _fused_front(self, obs2d, B):
        A, T = self.n_agent, self.T
        R = obs2d.shape[0]
        args = (obs2d, self.a1_w1, self.a1_b1, self.a1_w2, self.a1_b2,
                self.at_w1, self.at_b1, self.at_w2, self.at_b2,
                self.at_w3, self.at_b3)
        return pl.pallas_call(
            functools.partial(_actor1_attn_dist_kernel, T, A, B, self.slab_pad),
            out_shape=jax.ShapeDtypeStruct((R, self.slab_pad), jnp.float32),
            grid=(1,),
            in_specs=[_full_spec(a) for a in args],
            out_specs=pl.BlockSpec((R, self.slab_pad), lambda *_: (0, 0)),
            compiler_params=_compiler_params(),
        )(*args)

    # ---------------- actor ----------------
    def compute_actor(self, obs):
        B, A, N = obs.shape
        assert A == self.n_agent and N == self.obs_shape
        T, K, R = self.T, self.agent_per_group, B * A

        slab = self._fused_front(obs.reshape(R, N), B)            # (R, 128)
        current = slab[:, :T].reshape(B, A, T)
        old_thoughts = current
        init_prob = slab[:, T].reshape(B, A)
        dists = slab[:, T + 1:T + 1 + A].reshape(B, A, A)
        is_initiator = init_prob > self.thr

        # TODO(synk): argsort-based group selection / gather is data-dependent;
        # kept as JAX glue between the Pallas kernels.
        order = jnp.argsort(dists, axis=-1)
        sel = order[..., :K]                                      # (B, A, K)
        group = jnp.sum(jax.nn.one_hot(sel, A, dtype=jnp.float32), axis=-2)
        group = group * is_initiator[..., None].astype(jnp.float32)

        # group members in ascending agent index (matches torch gather order)
        members = jnp.sort(sel, axis=-1)                          # (B, A, K)
        b_idx = jnp.arange(B)[:, None, None]
        gathered = current[b_idx, members]                        # (B, A, K, T)
        x_lstm = jnp.transpose(gathered, (2, 0, 1, 3)).reshape(K, R, T)

        integrated = _bilstm(x_lstm, self.wih_cat, self.whh_f, self.b_f,
                             self.whh_b, self.b_b).reshape(K, B, A, T)

        # Vectorized last-writer-wins scatter. PyTorch writes with i ascending
        # (outer) and k ascending (inner): higher (i*K + k) priority wins.
        prio_base = (jnp.arange(A)[:, None] * K
                     + jnp.arange(K)[None, :]).astype(jnp.int32)  # (A, K)
        prio = jnp.where(is_initiator[:, :, None], prio_base[None], -1)   # (B,A,K)
        tgt = members[..., None] == jnp.arange(A)[None, None, None, :]    # (B,A,K,A)
        prio_tgt = jnp.where(tgt, prio[..., None], -1).reshape(B, A * K, A)
        best_prio = jnp.max(prio_tgt, axis=1)                     # (B, A)
        best_flat = jnp.argmax(prio_tgt, axis=1)                  # (B, A) = i*K + k
        has_writer = best_prio >= 0
        best_i = best_flat // K
        best_k = best_flat % K
        upd = integrated[best_k, jnp.arange(B)[:, None], best_i]  # (B, A, T)
        new_thoughts = jnp.where(has_writer[..., None], upd, current)

        action_slab = _dual_mlp(
            ("relu", "relu", "relu", "tanh"),
            current.reshape(R, T), new_thoughts.reshape(R, T),
            self.a2_w1a, self.a2_w1b, self.a2_b1,
            [(self.a2_w2, self.a2_b2), (self.a2_w3, self.a2_b3),
             (self.a2_w4, self.a2_b4)])
        action = action_slab[:, :self.act_shape].reshape(B, A, self.act_shape)

        return {
            "action": action,
            "group": group,
            "initiator_prob": init_prob,
            "is_initiator": is_initiator,
            "new_thoughts": new_thoughts,
            "old_thoughts": old_thoughts,
        }

    # ---------------- critic ----------------
    def compute_critic(self, inputs):
        obs, action = inputs["obs"], inputs["action"]
        if action.ndim == 2:
            action = action[..., None]
        B, A, N = obs.shape
        R = B * A
        q_slab = _dual_mlp(
            ("relu", "relu", "relu", "none"),
            obs.reshape(R, N), action.reshape(R, self.act_shape),
            self.c_w1a, self.c_w1b, self.c_b1,
            [(self.c_w2, self.c_b2), (self.c_w3, self.c_b3),
             (self.c_w4, self.c_b4)])
        q = q_slab[:, :1].reshape(B, A, 1)
        return {"q_value": q}

    # TODO(synk): optimize_actor_attention and _compute_delta_q rely on dynamic
    # nonzero-shaped indexing / per-initiator Python loops; not translated.

    def forward(self, inputs, mode, **kwargs):
        assert mode in self.mode, "not support forward mode: {}/{}".format(mode, self.mode)
        return getattr(self, mode)(inputs, **kwargs)


# ----------------------------------------------------------------------------
if __name__ == "__main__":
    key = jax.random.PRNGKey(0)
    kp, kobs = jax.random.split(key)

    B, A, OBS, T, ACT = 2, 4, 16, 32, 4
    model = ATOCPallas(kp, obs_shape=OBS, action_shape=ACT, thought_size=T,
                       n_agent=A, agent_per_group=2)

    obs = jax.random.normal(kobs, (B, A, OBS), jnp.float32)

    actor_out = model.forward(obs, mode="compute_actor")
    critic_out = model.forward({"obs": obs, "action": actor_out["action"]},
                               mode="compute_critic")

    jax.block_until_ready(actor_out["action"])
    jax.block_until_ready(actor_out["new_thoughts"])
    jax.block_until_ready(critic_out["q_value"])
    print("KERNEL_OK")
</pallas_src>

<mosaic_0001>
module attributes {stable_mosaic.version = 11 : i64} {
  func.func @_actor1_attn_dist_kernel(%arg0: i32, %arg1: memref<8x16xf32, #tpu.memory_space<vmem>>, %arg2: memref<16x32xf32, #tpu.memory_space<vmem>>, %arg3: memref<1x32xf32, #tpu.memory_space<vmem>>, %arg4: memref<32x32xf32, #tpu.memory_space<vmem>>, %arg5: memref<1x32xf32, #tpu.memory_space<vmem>>, %arg6: memref<32x64xf32, #tpu.memory_space<vmem>>, %arg7: memref<1x64xf32, #tpu.memory_space<vmem>>, %arg8: memref<64x64xf32, #tpu.memory_space<vmem>>, %arg9: memref<1x64xf32, #tpu.memory_space<vmem>>, %arg10: memref<64x1xf32, #tpu.memory_space<vmem>>, %arg11: memref<1x1xf32, #tpu.memory_space<vmem>>, %arg12: memref<8x128xf32, #tpu.memory_space<vmem>>) attributes {dimension_semantics = [#tpu.dimension_semantics<arbitrary>], iteration_bounds = array<i64: 1>, scalar_prefetch = 0 : i64, scratch_operands = 0 : i64, tpu.core_type = #tpu.core_type<tc>, window_params = [{pipeline_mode = #tpu.pipeline_mode<synchronous>, transform_indices = @transform_0, window_bounds = array<i64: 8, 16>}, {pipeline_mode = #tpu.pipeline_mode<synchronous>, transform_indices = @transform_1, window_bounds = array<i64: 16, 32>}, {pipeline_mode = #tpu.pipeline_mode<synchronous>, transform_indices = @transform_2, window_bounds = array<i64: 1, 32>}, {pipeline_mode = #tpu.pipeline_mode<synchronous>, transform_indices = @transform_3, window_bounds = array<i64: 32, 32>}, {pipeline_mode = #tpu.pipeline_mode<synchronous>, transform_indices = @transform_4, window_bounds = array<i64: 1, 32>}, {pipeline_mode = #tpu.pipeline_mode<synchronous>, transform_indices = @transform_5, window_bounds = array<i64: 32, 64>}, {pipeline_mode = #tpu.pipeline_mode<synchronous>, transform_indices = @transform_6, window_bounds = array<i64: 1, 64>}, {pipeline_mode = #tpu.pipeline_mode<synchronous>, transform_indices = @transform_7, window_bounds = array<i64: 64, 64>}, {pipeline_mode = #tpu.pipeline_mode<synchronous>, transform_indices = @transform_8, window_bounds = array<i64: 1, 64>}, {pipeline_mode = #tpu.pipeline_mode<synchronous>, transform_indices = @transform_9, window_bounds = array<i64: 64, 1>}, {pipeline_mode = #tpu.pipeline_mode<synchronous>, transform_indices = @transform_10, window_bounds = array<i64: 1, 1>}, {pipeline_mode = #tpu.pipeline_mode<synchronous>, transform_indices = @transform_11, window_bounds = array<i64: 8, 128>}]} {
    %c0 = arith.constant 0 : index
    %c0_0 = arith.constant 0 : index
    %0 = vector.load %arg1[%c0, %c0_0] : memref<8x16xf32, #tpu.memory_space<vmem>>, vector<8x16xf32>
    %c0_1 = arith.constant 0 : index
    %c0_2 = arith.constant 0 : index
    %1 = vector.load %arg2[%c0_1, %c0_2] : memref<16x32xf32, #tpu.memory_space<vmem>>, vector<16x32xf32>
    %cst = arith.constant dense<0.000000e+00> : vector<8x32xf32>
    %2 = tpu.matmul %0, %1, %cst {dimension_numbers = #tpu.dot_dimension_numbers<[1], [0], [0], [1], [0, 0, 1, 1], [], []>} : vector<8x16xf32>, vector<16x32xf32>, vector<8x32xf32> -> vector<8x32xf32>
    %c0_3 = arith.constant 0 : index
    %c0_4 = arith.constant 0 : index
    %3 = vector.load %arg3[%c0_3, %c0_4] : memref<1x32xf32, #tpu.memory_space<vmem>>, vector<1x32xf32>
    %4 = vector.broadcast %3 : vector<1x32xf32> to vector<8x32xf32>
    %5 = arith.addf %2, %4 : vector<8x32xf32>
    %cst_5 = arith.constant 0.000000e+00 : f32
    %6 = vector.broadcast %cst_5 : f32 to vector<8x32xf32>
    %7 = arith.maximumf %5, %6 : vector<8x32xf32>
    %c0_6 = arith.constant 0 : index
    %c0_7 = arith.constant 0 : index
    %8 = vector.load %arg4[%c0_6, %c0_7] : memref<32x32xf32, #tpu.memory_space<vmem>>, vector<32x32xf32>
    %cst_8 = arith.constant dense<0.000000e+00> : vector<8x32xf32>
    %9 = tpu.matmul %7, %8, %cst_8 {dimension_numbers = #tpu.dot_dimension_numbers<[1], [0], [0], [1], [0, 0, 1, 1], [], []>} : vector<8x32xf32>, vector<32x32xf32>, vector<8x32xf32> -> vector<8x32xf32>
    %c0_9 = arith.constant 0 : index
    %c0_10 = arith.constant 0 : index
    %10 = vector.load %arg5[%c0_9, %c0_10] : memref<1x32xf32, #tpu.memory_space<vmem>>, vector<1x32xf32>
    %11 = vector.broadcast %10 : vector<1x32xf32> to vector<8x32xf32>
    %12 = arith.addf %9, %11 : vector<8x32xf32>
    %cst_11 = arith.constant 0.000000e+00 : f32
    %13 = vector.broadcast %cst_11 : f32 to vector<8x32xf32>
    %14 = arith.maximumf %12, %13 : vector<8x32xf32>
    %c0_12 = arith.constant 0 : index
    %c0_13 = arith.constant 0 : index
    %15 = vector.load %arg6[%c0_12, %c0_13] : memref<32x64xf32, #tpu.memory_space<vmem>>, vector<32x64xf32>
    %cst_14 = arith.constant dense<0.000000e+00> : vector<8x64xf32>
    %16 = tpu.matmul %14, %15, %cst_14 {dimension_numbers = #tpu.dot_dimension_numbers<[1], [0], [0], [1], [0, 0, 1, 1], [], []>} : vector<8x32xf32>, vector<32x64xf32>, vector<8x64xf32> -> vector<8x64xf32>
    %c0_15 = arith.constant 0 : index
    %c0_16 = arith.constant 0 : index
    %17 = vector.load %arg7[%c0_15, %c0_16] : memref<1x64xf32, #tpu.memory_space<vmem>>, vector<1x64xf32>
    %18 = vector.broadcast %17 : vector<1x64xf32> to vector<8x64xf32>
    %19 = arith.addf %16, %18 : vector<8x64xf32>
    %cst_17 = arith.constant 0.000000e+00 : f32
    %20 = vector.broadcast %cst_17 : f32 to vector<8x64xf32>
    %21 = arith.maximumf %19, %20 : vector<8x64xf32>
    %c0_18 = arith.constant 0 : index
    %c0_19 = arith.constant 0 : index
    %22 = vector.load %arg8[%c0_18, %c0_19] : memref<64x64xf32, #tpu.memory_space<vmem>>, vector<64x64xf32>
    %cst_20 = arith.constant dense<0.000000e+00> : vector<8x64xf32>
    %23 = tpu.matmul %21, %22, %cst_20 {dimension_numbers = #tpu.dot_dimension_numbers<[1], [0], [0], [1], [0, 0, 1, 1], [], []>} : vector<8x64xf32>, vector<64x64xf32>, vector<8x64xf32> -> vector<8x64xf32>
    %c0_21 = arith.constant 0 : index
    %c0_22 = arith.constant 0 : index
    %24 = vector.load %arg9[%c0_21, %c0_22] : memref<1x64xf32, #tpu.memory_space<vmem>>, vector<1x64xf32>
    %25 = vector.broadcast %24 : vector<1x64xf32> to vector<8x64xf32>
    %26 = arith.addf %23, %25 : vector<8x64xf32>
    %cst_23 = arith.constant 0.000000e+00 : f32
    %27 = vector.broadcast %cst_23 : f32 to vector<8x64xf32>
    %28 = arith.maximumf %26, %27 : vector<8x64xf32>
    %c0_24 = arith.constant 0 : index
    %c0_25 = arith.constant 0 : index
    %29 = vector.load %arg10[%c0_24, %c0_25] : memref<64x1xf32, #tpu.memory_space<vmem>>, vector<64x1xf32>
    %cst_26 = arith.constant dense<0.000000e+00> : vector<8x1xf32>
    %30 = tpu.matmul %28, %29, %cst_26 {dimension_numbers = #tpu.dot_dimension_numbers<[1], [0], [0], [1], [0, 0, 1, 1], [], []>} : vector<8x64xf32>, vector<64x1xf32>, vector<8x1xf32> -> vector<8x1xf32>
    %c0_27 = arith.constant 0 : index
    %c0_28 = arith.constant 0 : index
    %31 = vector.load %arg11[%c0_27, %c0_28] : memref<1x1xf32, #tpu.memory_space<vmem>>, vector<1x1xf32>
    %32 = vector.broadcast %31 : vector<1x1xf32> to vector<8x1xf32>
    %33 = arith.addf %30, %32 : vector<8x1xf32>
    %34 = arith.negf %33 : vector<8x1xf32>
    %35 = math.exp %34 : vector<8x1xf32>
    %cst_29 = arith.constant 1.000000e+00 : f32
    %36 = vector.broadcast %cst_29 : f32 to vector<8x1xf32>
    %37 = arith.addf %36, %35 : vector<8x1xf32>
    %38 = arith.divf %36, %37 : vector<8x1xf32>
    %39 = vector.extract_strided_slice %14 {offsets = [0, 0], sizes = [4, 32], strides = [1, 1]} : vector<8x32xf32> to vector<4x32xf32>
    %40 = tpu.transpose %39, [1, 0] : vector<4x32xf32> -> vector<32x4xf32>
    %cst_30 = arith.constant dense<0.000000e+00> : vector<4x4xf32>
    %41 = tpu.matmul %39, %40, %cst_30 {dimension_numbers = #tpu.dot_dimension_numbers<[1], [0], [0], [1], [0, 0, 1, 1], [], []>} : vector<4x32xf32>, vector<32x4xf32>, vector<4x4xf32> -> vector<4x4xf32>
    %42 = arith.mulf %39, %39 : vector<4x32xf32>
    %cst_31 = arith.constant dense<0.000000e+00> : vector<4xf32>
    %43 = vector.multi_reduction <add>, %42, %cst_31 [1] : vector<4x32xf32> to vector<4xf32>
    %44 = vector.shape_cast %43 : vector<4xf32> to vector<4x1xf32>
    %45 = tpu.transpose %44, [1, 0] : vector<4x1xf32> -> vector<1x4xf32>
    %cst_32 = arith.constant 2.000000e+00 : f32
    %46 = vector.broadcast %cst_32 : f32 to vector<4x4xf32>
    %47 = arith.mulf %46, %41 : vector<4x4xf32>
    %48 = vector.broadcast %45 : vector<1x4xf32> to vector<4x4xf32>
    %49 = arith.subf %48, %47 : vector<4x4xf32>
    %50 = vector.broadcast %44 : vector<4x1xf32> to vector<4x4xf32>
    %51 = arith.addf %49, %50 : vector<4x4xf32>
    %52 = vector.extract_strided_slice %14 {offsets = [4, 0], sizes = [4, 32], strides = [1, 1]} : vector<8x32xf32> to vector<4x32xf32>
    %53 = tpu.transpose %52, [1, 0] : vector<4x32xf32> -> vector<32x4xf32>
    %cst_33 = arith.constant dense<0.000000e+00> : vector<4x4xf32>
    %54 = tpu.matmul %52, %53, %cst_33 {dimension_numbers = #tpu.dot_dimension_numbers<[1], [0], [0], [1], [0, 0, 1, 1], [], []>} : vector<4x32xf32>, vector<32x4xf32>, vector<4x4xf32> -> vector<4x4xf32>
    %55 = arith.mulf %52, %52 : vector<4x32xf32>
    %cst_34 = arith.constant dense<0.000000e+00> : vector<4xf32>
    %56 = vector.multi_reduction <add>, %55, %cst_34 [1] : vector<4x32xf32> to vector<4xf32>
    %57 = vector.shape_cast %56 : vector<4xf32> to vector<4x1xf32>
    %58 = tpu.transpose %57, [1, 0] : vector<4x1xf32> -> vector<1x4xf32>
    %cst_35 = arith.constant 2.000000e+00 : f32
    %59 = vector.broadcast %cst_35 : f32 to vector<4x4xf32>
    %60 = arith.mulf %59, %54 : vector<4x4xf32>
    %61 = vector.broadcast %58 : vector<1x4xf32> to vector<4x4xf32>
    %62 = arith.subf %61, %60 : vector<4x4xf32>
    %63 = vector.broadcast %57 : vector<4x1xf32> to vector<4x4xf32>
    %64 = arith.addf %62, %63 : vector<4x4xf32>
    %65 = tpu.concatenate %51, %64 in 0 : vector<4x4xf32>, vector<4x4xf32> -> vector<8x4xf32>
    %cst_36 = arith.constant 0.000000e+00 : f32
    %66 = vector.broadcast %cst_36 : f32 to vector<8x91xf32>
    %67 = tpu.concatenate %14, %38, %65, %66 in 1 : vector<8x32xf32>, vector<8x1xf32>, vector<8x4xf32>, vector<8x91xf32> -> vector<8x128xf32>
    %c0_37 = arith.constant 0 : index
    %c0_38 = arith.constant 0 : index
    %68 = vector.load %arg12[%c0_37, %c0_38] : memref<8x128xf32, #tpu.memory_space<vmem>>, vector<8x128xf32>
    tpu.vector_store %arg12[%c0_37, %c0_38], %67 {strides = array<i32>} : memref<8x128xf32, #tpu.memory_space<vmem>>, vector<8x128xf32>,
    return
  }
  func.func @transform_0(%arg0: i32) -> (i32, i32) {
    %c0_i32 = arith.constant 0 : i32
    %c0_i32_0 = arith.constant 0 : i32
    %c0_i32_1 = arith.constant 0 : i32
    return %c0_i32, %c0_i32_0 : i32, i32
  }
  func.func @transform_1(%arg0: i32) -> (i32, i32) {
    %c0_i32 = arith.constant 0 : i32
    %c0_i32_0 = arith.constant 0 : i32
    %c0_i32_1 = arith.constant 0 : i32
    return %c0_i32, %c0_i32_0 : i32, i32
  }
  func.func @transform_2(%arg0: i32) -> (i32, i32) {
    %c0_i32 = arith.constant 0 : i32
    %c0_i32_0 = arith.constant 0 : i32
    %c0_i32_1 = arith.constant 0 : i32
    return %c0_i32, %c0_i32_0 : i32, i32
  }
  func.func @transform_3(%arg0: i32) -> (i32, i32) {
    %c0_i32 = arith.constant 0 : i32
    %c0_i32_0 = arith.constant 0 : i32
    %c0_i32_1 = arith.constant 0 : i32
    return %c0_i32, %c0_i32_0 : i32, i32
  }
  func.func @transform_4(%arg0: i32) -> (i32, i32) {
    %c0_i32 = arith.constant 0 : i32
    %c0_i32_0 = arith.constant 0 : i32
    %c0_i32_1 = arith.constant 0 : i32
    return %c0_i32, %c0_i32_0 : i32, i32
  }
  func.func @transform_5(%arg0: i32) -> (i32, i32) {
    %c0_i32 = arith.constant 0 : i32
    %c0_i32_0 = arith.constant 0 : i32
    %c0_i32_1 = arith.constant 0 : i32
    return %c0_i32, %c0_i32_0 : i32, i32
  }
  func.func @transform_6(%arg0: i32) -> (i32, i32) {
    %c0_i32 = arith.constant 0 : i32
    %c0_i32_0 = arith.constant 0 : i32
    %c0_i32_1 = arith.constant 0 : i32
    return %c0_i32, %c0_i32_0 : i32, i32
  }
  func.func @transform_7(%arg0: i32) -> (i32, i32) {
    %c0_i32 = arith.constant 0 : i32
    %c0_i32_0 = arith.constant 0 : i32
    %c0_i32_1 = arith.constant 0 : i32
    return %c0_i32, %c0_i32_0 : i32, i32
  }
  func.func @transform_8(%arg0: i32) -> (i32, i32) {
    %c0_i32 = arith.constant 0 : i32
    %c0_i32_0 = arith.constant 0 : i32
    %c0_i32_1 = arith.constant 0 : i32
    return %c0_i32, %c0_i32_0 : i32, i32
  }
  func.func @transform_9(%arg0: i32) -> (i32, i32) {
    %c0_i32 = arith.constant 0 : i32
    %c0_i32_0 = arith.constant 0 : i32
    %c0_i32_1 = arith.constant 0 : i32
    return %c0_i32, %c0_i32_0 : i32, i32
  }
  func.func @transform_10(%arg0: i32) -> (i32, i32) {
    %c0_i32 = arith.constant 0 : i32
    %c0_i32_0 = arith.constant 0 : i32
    %c0_i32_1 = arith.constant 0 : i32
    return %c0_i32, %c0_i32_0 : i32, i32
  }
  func.func @transform_11(%arg0: i32) -> (i32, i32) {
    %c0_i32 = arith.constant 0 : i32
    %c0_i32_0 = arith.constant 0 : i32
    %c0_i32_1 = arith.constant 0 : i32
    return %c0_i32, %c0_i32_0 : i32, i32
  }
}

</mosaic_0001>

<bundles_post_ra>
// kernel: tpu_custom_call.1
= control target key start
LH: loop header
LB: loop body
LE: loop exit
PB: predicated region body
PF: predicated region fallthrough
CT: control target
= control target key end

     0   :  { %s775_s0 = inlined_call_operand.hbm [shape: f32[8,16], index: 0, kind: input, shape index: {}]   ;;  %s776_s1 = inlined_call_operand.hbm [shape: f32[16,32], index: 1, kind: input, shape index: {}]   ;;  %s777_s2 = inlined_call_operand.vmem [shape: f32[1,32], index: 2, kind: input, shape index: {}]   ;;  %s778_s3 = inlined_call_operand.hbm [shape: f32[32,32], index: 3, kind: input, shape index: {}]   ;;  %s779_s4 = inlined_call_operand.vmem [shape: f32[1,32], index: 4, kind: input, shape index: {}]   ;;  %s780_s5 = inlined_call_operand.hbm [shape: f32[32,64], index: 5, kind: input, shape index: {}]   ;;  %s781_s6 = inlined_call_operand.vmem [shape: f32[1,64], index: 6, kind: input, shape index: {}]   ;;  %s782_s7 = inlined_call_operand.vmem [shape: f32[64,64], index: 7, kind: input, shape index: {}]   ;;  %s783_s8 = inlined_call_operand.vmem [shape: f32[1,64], index: 8, kind: input, shape index: {}]   ;;  %s784_s9 = inlined_call_operand.vmem [shape: f32[64,1], index: 9, kind: input, shape index: {}]   ;;  %s785_s10 = inlined_call_operand.<no memory space> [shape: f32[1,1], index: 10, kind: input, shape index: {}]   ;;  %s786_s11 = inlined_call_operand.hbm [shape: f32[8,128], index: 11, kind: output, shape index: {}]  }
   0x1   :  { %v16_v0 = vstv %s785_s10 }
   0x2   :  { %17 = vst [vmem:[#allocation2] sm:$0x1] %v16_v0 }
   0x3   :  { %18 = vsyncpa [#allocation4], 0 }
   0x4   :  { %19 = vsyncpa [#allocation7], 0 }
   0x5   :  { %20 = vsyncpa [#allocation10], 0  ;;  %s37_s21 = sshll.u32 %s776_s1, 4  ;;  %s38_s21 = int_to_ptr.hbm [resolvable:$true] %s37_s21 }
   0x6   :  { %21 = vsyncpa [#allocation5], 0  ;;  %s612_s22 = smov [#allocation6]   ;;  %s27_s26 = sshll.u32 %s775_s0, 4  ;;  %s28_s26 = int_to_ptr.hbm [resolvable:$true] %s27_s26 }
   0x7   :  { %s39_s23 = sshll.u32 %s612_s22, 4  ;;  %s613_s27 = smov 128   ;;  %s40_s23 = int_to_ptr.vmem [resolvable:$true] %s39_s23 }
   0x8   :  { %s614_s28 = smov 8   ;;  %s615_s10 = smov [#allocation3]  }
   0x9   :  { %45 = dma.hbm_to_vmem [thread:$0]  %s38_s21, 256, %s40_s23, [#allocation7], %s613_s27, %s613_s27, %s614_s28  }
   0xa   :  { %s29_s29 = sshll.u32 %s615_s10, 4  ;;  %s52_s13 = sshll.u32 %s778_s3, 4  ;;  %s30_s29 = int_to_ptr.vmem [resolvable:$true] %s29_s29  ;;  %s53_s13 = int_to_ptr.hbm [resolvable:$true] %s52_s13 }
   0xb   :  { %32 = dma.hbm_to_vmem [thread:$0]  %s28_s26, 128, %s30_s29, [#allocation4]  }
   0xc   :  { %s67_s15 = sshll.u32 %s780_s5, 4  ;;  %s616_s16 = smov [#allocation8]   ;;  %s68_s15 = int_to_ptr.hbm [resolvable:$true] %s67_s15 }
   0xd   :  { %s54_s17 = sshll.u32 %s616_s16, 4  ;;  %s617_s0 = smov [#allocation9]   ;;  %s55_s17 = int_to_ptr.vmem [resolvable:$true] %s54_s17 }
   0xe   :  { %60 = dma.hbm_to_vmem [thread:$0]  %s53_s13, 512, %s55_s17, [#allocation7], %s613_s27, %s613_s27, %s614_s28  }
   0xf   :  { %s69_s18 = sshll.u32 %s617_s0, 4  ;;  %s70_s18 = int_to_ptr.vmem [resolvable:$true] %s69_s18 }
  0x10   :  { %75 = dma.hbm_to_vmem [thread:$0]  %s68_s15, 512, %s70_s18, [#allocation10], %s613_s27, %s613_s27, %s614_s28  }
  0x11   :  { %604 = dma.done.wait [#allocation4], 128  }
  0x12   :  { %605 = vsyncadd [#allocation4], 4294967168 }
  0x13   :  { %606 = dma.done.wait [#allocation7], 768  }
  0x14   :  { %607 = vsyncadd [#allocation7], 4294966528 }
  0x15   :  { %608 = dma.done.wait [#allocation10], 512  }
  0x16   :  { %609 = vsyncadd [#allocation10], 4294966784  ;;  %v104_v1 = vld [vmem:[#allocation6 + $0x8] sm:$0xff]  ;;  %v103_v2 = vld [vmem:[#allocation6] sm:$0xff]  ;;  %vm109_vm0 = vcmask 130048   ;;  %vm142_vm1 = vcmask 261120  }
  0x17   :  { %127 = vmatpush.msra.mxu0 %v104_v1  ;;  %v102_v3 = vld [vmem:[#allocation3] sm:$0xff]  ;;  %v137_v4 = vld [vmem:[#allocation8 + $0x18] sm:$0xff]  ;;  %v136_v5 = vld [vmem:[#allocation8 + $0x10] sm:$0xff]  ;;  %vm374_vm2 = vcmask 261124   ;;  %vm311_vm3 = vcmask 257024   ;;  %vm211_vm4 = vcmask 523264  }
  0x18   :  { %158 = vmatpush.msra.mxu1 %v137_v4  ;;  %v135_v6 = vld [vmem:[#allocation8 + $0x8] sm:$0xff]  ;;  %v134_v7 = vld [vmem:[#allocation8] sm:$0xff]  ;;  %v170_v8 = vld [vmem:[#allocation9 + $0x18] sm:$0xff]  ;;  %vm420_vm9 = vcmask 1043456   ;;  %vm431_vm10 = vcmask 269312   ;;  %s620_s27 = smov [#allocation11]  }
  0x19   :  { %128 = vmatpush.msra.mxu0 %v103_v2  ;;  %190 = vmatpush.msra.mxu2 %v170_v8  ;;  %v475_v9 = vld [vmem:[%s777_s2] ss:$0 sm:$0xff]  ;;  %v169_v13 = vld [vmem:[#allocation9 + $0x10] sm:$0xff]  ;;  %v168_v14 = vld [vmem:[#allocation9 + $0x8] sm:$0xff]  ;;  %s441_s28 = sshll.u32 %s620_s27, 4  ;;  %s443_s30 = sshll.u32 %s786_s11, 4  ;;  %s442_s28 = int_to_ptr.vmem [resolvable:$true] %s441_s28  ;;  %s444_s30 = int_to_ptr.hbm [resolvable:$true] %s443_s30 }
  0x1a   :  { %455 = vmatmul.msk.f32.vlgmr.msra.gmra.mxu0 %vm109_vm0, %v102_v3  ;;  %159 = vmatpush.msra.mxu1 %v136_v5  ;;  %v167_v15 = vld [vmem:[#allocation9] sm:$0xff]  ;;  %v205_v25 = vld [vmem:[%s782_s7 + $0x30] sm:$0xff]  ;;  %v204_v26 = vld [vmem:[%s782_s7 + $0x28] sm:$0xff]  ;;  %vm433_vm11 = vcmask 302080  }
  0x1b   :  { %191 = vmatpush.msra.mxu2 %v169_v13  ;;  %v476_v16 = vld [vmem:[%s779_s4] ss:$0 sm:$0xff]  ;;  %v206_v24 = vld [vmem:[%s782_s7 + $0x38] sm:$0xff]  ;;  %v201_v29 = vld [vmem:[%s782_s7 + $0x10] sm:$0xff] }
  0x1c   :  { %160 = vmatpush.msra.mxu1 %v135_v6  ;;  %223 = vmatpush.msra.mxu3 %v206_v24  ;;  %v203_v27 = vld [vmem:[%s782_s7 + $0x20] sm:$0xff]  ;;  %v202_v28 = vld [vmem:[%s782_s7 + $0x18] sm:$0xff]  ;;  %v200_v30 = vld [vmem:[%s782_s7 + $0x8] sm:$0xff] }
  0x1d   :  { %192 = vmatpush.msra.mxu2 %v168_v14  ;;  %v199_v31 = vld [vmem:[%s782_s7] sm:$0xff]  ;;  %v243_v32 = vld [vmem:[%s784_s9 + $0x38] sm:$0xff]  ;;  %v242_v33 = vld [vmem:[%s784_s9 + $0x30] sm:$0xff] }
  0x1e   :  { %161 = vmatpush.msra.mxu1 %v134_v7  ;;  %224 = vmatpush.msra.mxu3 %v205_v25  ;;  %v241_v34 = vld [vmem:[%s784_s9 + $0x28] sm:$0xff]  ;;  %v240_v35 = vld [vmem:[%s784_s9 + $0x20] sm:$0xff]  ;;  %v239_v36 = vld [vmem:[%s784_s9 + $0x18] sm:$0xff] }
  0x1f   :  { %193 = vmatpush.msra.mxu2 %v167_v15  ;;  %259 = vmatpush.msrb.mxu0 %v243_v32  ;;  %v477_v39 = vld [vmem:[%s781_s6] ss:$0 sm:$0xff]  ;;  %v238_v44 = vld [vmem:[%s784_s9 + $0x10] sm:$0xff]  ;;  %v237_v45 = vld [vmem:[%s784_s9 + $0x8] sm:$0xff] }
  0x20   :  { %225 = vmatpush.msra.mxu3 %v204_v26  ;;  %v236_v46 = vld [vmem:[%s784_s9] sm:$0xff]  ;;  %s619_s9 = smov 33  }
  0x21   :  { %260 = vmatpush.msrb.mxu0 %v242_v33  ;;  %v478_v47 = vld [vmem:[%s783_s8] ss:$0 sm:$0xff]  ;;  %s618_s8 = smov 32  }
  0x22   :  { %226 = vmatpush.msra.mxu3 %v203_v27  ;;  %v479_v51 = vld [vmem:[#allocation2] ss:$0 sm:$0xff] }
  0x23   :  { %261 = vmatpush.msrb.mxu0 %v241_v34 }
  0x24   :  { %227 = vmatpush.msra.mxu3 %v202_v28 }
  0x25   :  { %262 = vmatpush.msrb.mxu0 %v240_v35 }
  0x26   :  { %228 = vmatpush.msra.mxu3 %v201_v29 }
  0x27   :  { %263 = vmatpush.msrb.mxu0 %v239_v36 }
  0x28   :  { %229 = vmatpush.msra.mxu3 %v200_v30 }
  0x29   :  { %264 = vmatpush.msrb.mxu0 %v238_v44 }
  0x2a   :  { %230 = vmatpush.msra.mxu3 %v199_v31 }
  0x2b   :  { %265 = vmatpush.msrb.mxu0 %v237_v45 }
  0x2d   :  { %266 = vmatpush.msrb.mxu0 %v236_v46 }
  0x97   :  { %v130_v10 = vpop.f32.mrf.mxu0 }
  0x98   :  { %v131_v11 = vadd.f32 %v475_v9, %v130_v10 }
  0x9a   :  { %v133_v12 = vmax.f32 %v131_v11, 0.0 }
  0x9c   :  { %456 = vmatmul.msk.f32.vlgmr.msra.gmra.mxu1 %vm142_vm1, %v133_v12 }
 0x119   :  { %v163_v17 = vpop.f32.mrf.mxu1 }
 0x11a   :  { %v164_v18 = vadd.f32 %v476_v16, %v163_v17 }
 0x11c   :  { %v703_v19 = vmax.f32 %v164_v18, 0.0 }
 0x11e   :  { %457 = vmatmul.msk.f32.vlgmr.msra.gmra.mxu2 %vm142_vm1, %v703_v19  ;;  %461 = vmatpush.xpose.msk.msrb.mxu1 %vm142_vm1, %v703_v19  ;;  %v351_v20 = vrot.slane %v703_v19, 4  ;;  %v310_v21 = vmul.f32 %v703_v19, %v703_v19 }
 0x120   :  { %463 = vmatpush.xpose.msk.msrb.mxu2 %vm142_vm1, %v351_v20  ;;  %v375_v22 = vsel %vm374_vm2, %v310_v21, 0.0  ;;  %v312_v23 = vsel %vm311_vm3, %v310_v21, 0.0 }
 0x121   :  { %376 = vadd.xlane.f32.xlu0 %v375_v22  ;;  %462 = vmatmul.msk.f32.vlgmr.msrb.gmra.mxu1 %vm142_vm1, %v703_v19 }
 0x126   :  { %464 = vmatmul.msk.f32.vlgmr.msrb.gmra.mxu2 %vm142_vm1, %v351_v20 }
 0x129   :  { %313 = vadd.xlane.f32.xlu0 %v312_v23 }
 0x194   :  { %v377_v37 = vpop.xlane.xlu0 %376 }
 0x195   :  { %v379_v42 = vrot.slane %v377_v37, 4 }
 0x19c   :  { %v314_v38 = vpop.xlane.xlu0 %313 }
 0x19d   :  { %315 = vxpose.xlu1.b32.start.end [1/1] (short) (narrow) %v314_v38, 8 }
 0x19e   :  { %v307_v5 = vpop.f32.mrf.mxu1 }
 0x19f   :  { %v347_v10 = vmul.f32 2.0, %v307_v5 }
 0x1a1   :  { %v195_v40 = vpop.f32.mrf.mxu2 }
 0x1a2   :  { %v196_v41 = vadd.f32 %v477_v39, %v195_v40 }
 0x1a4   :  { %v198_v43 = vmax.f32 %v196_v41, 0.0 }
 0x1a5   :  { %381 = vxpose.xlu1.b32.start.end [1/1] (short) (narrow) %v379_v42, 8 }
 0x1a6   :  { %458 = vmatmul.msk.f32.vlgmr.msra.gmra.mxu3 %vm211_vm4, %v198_v43 }
 0x1a9   :  { %v371_v60 = vpop.f32.mrf.mxu2 }
 0x1aa   :  { %v413_v0 = vmul.f32 2.0, %v371_v60 }
 0x229   :  { %v232_v48 = vpop.f32.mrf.mxu3 }
 0x22a   :  { %v233_v49 = vadd.f32 %v478_v47, %v232_v48 }
 0x22c   :  { %v235_v50 = vmax.f32 %v233_v49, 0.0 }
 0x22e   :  { %459 = vmatmul.msk.f32.vlgmr.msrb.gmra.mxu0 %vm211_vm4, %v235_v50 }
 0x241   :  { %v331_v55 = vpop.trf.xlu1 }
 0x242   :  { %v348_v7 = vperm.slane %v331_v55, 0 }
 0x244   :  { %v349_v13 = vsub.f32 %v348_v7, %v347_v10 }
 0x246   :  { %v350_v15 = vadd.f32 %v349_v13, %v314_v38 }
 0x249   :  { %v397_v58 = vpop.trf.xlu1 }
 0x24a   :  { %v414_v62 = vperm.slane %v397_v58, 0 }
 0x24c   :  { %v415_v4 = vsub.f32 %v414_v62, %v413_v0 }
 0x24e   :  { %v416_v11 = vadd.f32 %v415_v4, %v379_v42 }
 0x250   :  { %v418_v14 = vrot.slane %v416_v11, 4 }
 0x252   :  { %v421_v16 = vsel %vm420_vm9, %v350_v15, %v418_v14 }
 0x2ab   :  { %v268_v52 = vpop.f32.mrf.mxu0 }
 0x2ac   :  { %v269_v53 = vadd.f32 %v479_v51, %v268_v52 }
 0x2ae   :  { %v460_v54 = vmul.f32 -1.442695, %v269_v53 }
 0x2b0   :  { %480 = vpow2.f32 %v460_v54 }
 0x2b6   :  { %v481_v56 = vpop.eup %480 }
 0x2b7   :  { %v274_v57 = vadd.f32 1.0, %v481_v56 }
 0x2b9   :  { %482 = vrcp.f32 %v274_v57  ;;  %v286_v1 = vand.u32 2147483648, %v274_v57  ;;  %v284_v3 = vand.u32 2147483647, %v274_v57  ;;  %vm280_vm6 = vweird.f32 %v274_v57 }
 0x2bb   :  { %v287_v8 = vor.u32 1.1754944e-38, %v286_v1  ;;  %vm285_vm8 = vcmp.eq.f32.partialorder %v284_v3, 8.507059e+37 }
 0x2bf   :  { %v483_v59 = vpop.eup %482 }
 0x2c0   :  { %v276_v61 = vmul.f32 %v483_v59, %v274_v57  ;;  %vm281_vm5 = vweird.f32 %v483_v59 }
 0x2c1   :  { %vm282_vm7 = vmor %vm280_vm6, %vm281_vm5 }
 0x2c2   :  { %v277_v63 = vsub.f32 1.0, %v276_v61 }
 0x2c4   :  { %v278_v2 = vmul.f32 %v483_v59, %v277_v63 }
 0x2c6   :  { %v279_v6 = vadd.f32 %v483_v59, %v278_v2 }
 0x2c8   :  { %v283_v9 = vsel %vm282_vm7, %v483_v59, %v279_v6 }
 0x2c9   :  { %v288_v12 = vsel %vm285_vm8, %v287_v8, %v283_v9 }
 0x2ca   :  { %423 = vrot.lane.b32.xlu2 %v288_v12, %s618_s8 }
 0x2d2   :  { %427 = vrot.lane.b32.xlu2 %v421_v16, %s619_s9 }
 0x324   :  { %v424_v17 = vpop.permute.xlu2 %423 }
 0x325   :  { %v430_v18 = vsel %vm142_vm1, %v703_v19, %v424_v17 }
 0x32c   :  { %v428_v20 = vpop.permute.xlu2 %427 }
 0x32d   :  { %v432_v21 = vsel %vm431_vm10, %v430_v18, %v428_v20 }
 0x32e   :  { %v434_v22 = vsel %vm433_vm11, %v432_v21, 0.0 }
 0x32f   :  { %435 = vst [vmem:[#allocation11] sm:$0xff] %v434_v22 }
 0x330   :  { %446 = dma.vmem_to_hbm [thread:$0]  %s442_s28, 128, %s444_s30, [#allocation5]  }
 0x331   :  { %610 = dma.done.wait [#allocation5], 128  }
 0x332   :  { %611 = vsyncadd [#allocation5], 4294967168 }
 0x333   :  { %451 = vsyncpa [#allocation4], 1 }
 0x334   :  { %452 = vsyncpa [#allocation7], 1 }
 0x335   :  { %453 = vsyncpa [#allocation10], 1 }
 0x336   :  { %454 = vsyncpa [#allocation5], 1 }

</bundles_post_ra>
